<compile_context>
chip_gen: v7x
topology: tpu7x:2x2x1
jax: 0.10.0
libtpu: 0.0.40
codegen_flags: <defaults>
</compile_context>

<pallas_src>
import functools

import jax
import jax.numpy as jnp
from jax import lax
from jax.experimental import pallas as pl
from jax.experimental.pallas import tpu as pltpu


def _round_up(x, m):
    return (x + m - 1) // m * m


# --------------------------------------------------------------------------
# Pallas kernel 1: tiled conv-as-matmul with f32 accumulator (+ fused LeakyReLU)
# --------------------------------------------------------------------------
def _conv_mm_kernel(a_ref, w_ref, o_ref, acc_ref, *, slope, fuse_act):
    k = pl.program_id(2)

    @pl.when(k == 0)
    def _init():
        acc_ref[...] = jnp.zeros_like(acc_ref)

    acc_ref[...] += jnp.dot(a_ref[...], w_ref[...],
                            preferred_element_type=jnp.float32)

    @pl.when(k == pl.num_programs(2) - 1)
    def _finalize():
        y = acc_ref[...]
        if fuse_act:
            y = jnp.where(y > 0, y, slope * y)        # LeakyReLU(0.2)
        o_ref[...] = y


# --------------------------------------------------------------------------
# Pallas kernel 2: per-channel affine (folded BatchNorm) + LeakyReLU
# --------------------------------------------------------------------------
def _affine_act_kernel(x_ref, scale_ref, shift_ref, o_ref, *, slope):
    y = x_ref[...] * scale_ref[...] + shift_ref[...]
    o_ref[...] = jnp.where(y > 0, y, slope * y)


# --------------------------------------------------------------------------
# Plain-JAX glue: im2col in NHWC / (KH, KW, Cin) column order
# --------------------------------------------------------------------------
def _im2col_nhwc(x, kh, kw, stride, pad):
    n, h, w, c = x.shape
    xp = jnp.pad(x, ((0, 0), (pad, pad), (pad, pad), (0, 0)))
    oh = (h + 2 * pad - kh) // stride + 1
    ow = (w + 2 * pad - kw) // stride + 1
    cols = []
    for i in range(kh):
        for j in range(kw):
            cols.append(xp[:, i:i + stride * oh:stride, j:j + stride * ow:stride, :])
    p = jnp.stack(cols, axis=3)                       # (N, OH, OW, KH*KW, C)
    return p.reshape(n * oh * ow, kh * kw * c), oh, ow


# --------------------------------------------------------------------------
# Conv2d(bias=False) [+ fused LeakyReLU] via the tiled Pallas matmul kernel
# --------------------------------------------------------------------------
def conv2d_pallas(x_nhwc, w_oihw, stride, pad, *, fuse_act, slope=0.2):
    n, _, _, cin = x_nhwc.shape
    cout, _, kh, kw = w_oihw.shape

    patches, oh, ow = _im2col_nhwc(x_nhwc, kh, kw, stride, pad)
    m, k = patches.shape
    wm = w_oihw.transpose(2, 3, 1, 0).reshape(kh * kw * cin, cout)   # (K, Cout)

    # --- tile sizes (multiples of (8,128); sized well under any VMEM limit) ---
    tk = min(512, _round_up(k, 128))
    kp = _round_up(k, tk)
    tm = min(256, _round_up(m, 8))
    mp = _round_up(m, tm)
    cpad = _round_up(cout, 128)                       # lane-dense output
    tn = 256 if cpad % 256 == 0 else 128

    # --- pad + cast to bf16 for the MXU (f32 accumulate inside the kernel) ---
    a = jnp.pad(patches.astype(jnp.bfloat16), ((0, mp - m), (0, kp - k)))
    b = jnp.pad(wm.astype(jnp.bfloat16), ((0, kp - k), (0, cpad - cout)))

    grid = (mp // tm, cpad // tn, kp // tk)
    flops = 2 * mp * kp * cpad
    bytes_accessed = (mp * kp * 2) * (cpad // tn) + (kp * cpad * 2) * (mp // tm) \
        + mp * cpad * 4

    out_pad = pl.pallas_call(
        functools.partial(_conv_mm_kernel, slope=slope, fuse_act=fuse_act),
        out_shape=jax.ShapeDtypeStruct((mp, cpad), jnp.float32),
        grid=grid,
        in_specs=[
            pl.BlockSpec((tm, tk), lambda i, j, kk: (i, kk)),   # patches
            pl.BlockSpec((tk, tn), lambda i, j, kk: (kk, j)),   # weights: const in i
        ],
        out_specs=pl.BlockSpec((tm, tn), lambda i, j, kk: (i, j)),
        scratch_shapes=[pltpu.VMEM((tm, tn), jnp.float32)],
        compiler_params=pltpu.CompilerParams(
            dimension_semantics=("parallel", "parallel", "arbitrary"),
            vmem_limit_bytes=32 * 1024 * 1024),
        cost_estimate=pl.CostEstimate(flops=flops, transcendentals=0,
                                      bytes_accessed=bytes_accessed),
    )(a, b)

    return out_pad, (n, oh, ow, cout, m)


# --------------------------------------------------------------------------
# BatchNorm (batch statistics) folded to affine + LeakyReLU, applied by Pallas
# --------------------------------------------------------------------------
def batchnorm_leaky_pallas(y_pad, m, c, gamma, beta, *, eps=1e-5, slope=0.2):
    mp, cpad = y_pad.shape
    valid = y_pad[:m, :c]                             # (M, C) real conv output
    mean = jnp.mean(valid, axis=0)                    # per-channel batch stats
    var = jnp.var(valid, axis=0)                      # biased, like torch training BN
    scale = gamma / jnp.sqrt(var + eps)               # (C,)
    shift = beta - mean * scale                       # (C,)
    scale_p = jnp.pad(scale.reshape(1, c), ((0, 0), (0, cpad - c))).astype(jnp.float32)
    shift_p = jnp.pad(shift.reshape(1, c), ((0, 0), (0, cpad - c))).astype(jnp.float32)

    tm = min(256, mp)
    tn = 256 if cpad % 256 == 0 else 128

    return pl.pallas_call(
        functools.partial(_affine_act_kernel, slope=slope),
        out_shape=jax.ShapeDtypeStruct((mp, cpad), jnp.float32),
        grid=(mp // tm, cpad // tn),
        in_specs=[
            pl.BlockSpec((tm, tn), lambda i, j: (i, j)),
            pl.BlockSpec((1, tn), lambda i, j: (0, j)),
            pl.BlockSpec((1, tn), lambda i, j: (0, j)),
        ],
        out_specs=pl.BlockSpec((tm, tn), lambda i, j: (i, j)),
        compiler_params=pltpu.CompilerParams(
            dimension_semantics=("parallel", "parallel"),
            vmem_limit_bytes=32 * 1024 * 1024),
    )(y_pad, scale_p, shift_p)


# --------------------------------------------------------------------------
# Model definition (mirrors DCGAN_D.__init__)
# --------------------------------------------------------------------------
def build_dcgan_d(key, isize, nz, nc, ndf, n_extra_layers=0):
    assert isize % 16 == 0, 'isize has to be a multiple of 16'
    del nz  # unused by the discriminator (kept for signature parity)
    layers = []

    def nxt_key():
        nonlocal key
        key, sub = jax.random.split(key)
        return sub

    def mk_w(shape):
        return 0.02 * jax.random.normal(nxt_key(), shape, jnp.float32)

    def mk_bn(c):
        return dict(gamma=jnp.ones((c,), jnp.float32),
                    beta=jnp.zeros((c,), jnp.float32))

    # initial: Conv2d(nc, ndf, 4, 2, 1) + LeakyReLU(0.2)
    layers.append(dict(w=mk_w((ndf, nc, 4, 4)), stride=2, pad=1, act=True, bn=None))
    csize, cndf = isize // 2, ndf
    # extra layers: Conv2d(cndf, cndf, 3, 1, 1) + BatchNorm2d + LeakyReLU(0.2)
    for _ in range(n_extra_layers):
        layers.append(dict(w=mk_w((cndf, cndf, 3, 3)), stride=1, pad=1,
                           act=True, bn=mk_bn(cndf)))
    # pyramid: Conv2d(cndf, 2*cndf, 4, 2, 1) + BatchNorm2d + LeakyReLU(0.2)
    while csize > 4:
        layers.append(dict(w=mk_w((cndf * 2, cndf, 4, 4)), stride=2, pad=1,
                           act=True, bn=mk_bn(cndf * 2)))
        cndf *= 2
        csize //= 2
    # final: Conv2d(cndf, 1, 4, 1, 0), no BN, no activation
    layers.append(dict(w=mk_w((1, cndf, 4, 4)), stride=1, pad=0, act=False, bn=None))
    return layers


def dcgan_d_forward(x_nchw, layers):
    h = jnp.transpose(x_nchw, (0, 2, 3, 1))           # NCHW -> NHWC once
    for lyr in layers:
        fuse_act = lyr["act"] and (lyr["bn"] is None)
        y_pad, (n, oh, ow, cout, m) = conv2d_pallas(
            h, lyr["w"], lyr["stride"], lyr["pad"], fuse_act=fuse_act)
        if lyr["bn"] is not None:
            y_pad = batchnorm_leaky_pallas(
                y_pad, m, cout, lyr["bn"]["gamma"], lyr["bn"]["beta"])
        h = y_pad[:m, :cout].reshape(n, oh, ow, cout)  # NHWC for the next layer
    # h: (N, 1, 1, 1); torch: output.mean(0).view(1)
    return jnp.mean(h, axis=0).reshape(1)


# --------------------------------------------------------------------------
# Pure-JAX reference (same bf16 matmul quantization, f32 accumulation)
# --------------------------------------------------------------------------
def _ref_forward(x_nchw, layers, eps=1e-5):
    h = x_nchw
    for lyr in layers:
        h = lax.conv_general_dilated(
            h.astype(jnp.bfloat16), lyr["w"].astype(jnp.bfloat16),
            (lyr["stride"],) * 2, [(lyr["pad"], lyr["pad"])] * 2,
            dimension_numbers=("NCHW", "OIHW", "NCHW"),
            preferred_element_type=jnp.float32)
        if lyr["bn"] is not None:
            mean = jnp.mean(h, axis=(0, 2, 3), keepdims=True)
            var = jnp.var(h, axis=(0, 2, 3), keepdims=True)
            g = lyr["bn"]["gamma"].reshape(1, -1, 1, 1)
            b = lyr["bn"]["beta"].reshape(1, -1, 1, 1)
            h = g * (h - mean) / jnp.sqrt(var + eps) + b
        if lyr["act"]:
            h = jnp.where(h > 0, h, 0.2 * h)
    return jnp.mean(h, axis=0).reshape(1)


if __name__ == "__main__":
    key = jax.random.PRNGKey(0)
    kx, kparams = jax.random.split(key)

    # small-but-valid instantiation: isize=16, nc=3, ndf=8, 1 extra layer, batch=2
    isize, nz, nc, ndf, n_extra = 16, 100, 3, 8, 1
    x = jax.random.normal(kx, (2, nc, isize, isize), jnp.float32)

    layers = build_dcgan_d(kparams, isize, nz, nc, ndf, n_extra_layers=n_extra)

    out = jax.block_until_ready(dcgan_d_forward(x, layers))
    ref = jax.block_until_ready(_ref_forward(x, layers))

    assert out.shape == (1,), out.shape
    assert jnp.allclose(out, ref, rtol=1e-2, atol=1e-2), (out, ref)

    print("KERNEL_OK")
</pallas_src>

<mosaic_0001>
module attributes {stable_mosaic.version = 11 : i64} {
  func.func @_conv_mm_kernel(%arg0: i32, %arg1: i32, %arg2: i32, %arg3: memref<128x128xbf16, #tpu.memory_space<vmem>>, %arg4: memref<128x128xbf16, #tpu.memory_space<vmem>>, %arg5: memref<128x128xf32, #tpu.memory_space<vmem>>, %arg6: memref<128x128xf32, #tpu.memory_space<vmem>>) attributes {dimension_semantics = [#tpu.dimension_semantics<parallel>, #tpu.dimension_semantics<parallel>, #tpu.dimension_semantics<arbitrary>], iteration_bounds = array<i64: 1, 1, 1>, scalar_prefetch = 0 : i64, scratch_operands = 1 : i64, tpu.core_type = #tpu.core_type<tc>, window_params = [{transform_indices = @transform_0, window_bounds = array<i64: 128, 128>}, {transform_indices = @transform_1, window_bounds = array<i64: 128, 128>}, {transform_indices = @transform_2, window_bounds = array<i64: 128, 128>}]} {
    %c0_i32 = arith.constant 0 : i32
    %0 = arith.cmpi eq, %arg2, %c0_i32 : i32
    %1 = arith.extui %0 : i1 to i32
    %c0_i32_0 = arith.constant 0 : i32
    %2 = arith.cmpi ne, %1, %c0_i32_0 : i32
    scf.if %2 {
      %cst_10 = arith.constant 0.000000e+00 : f32
      %12 = vector.broadcast %cst_10 : f32 to vector<128x128xf32>
      %c0_11 = arith.constant 0 : index
      %c0_12 = arith.constant 0 : index
      %13 = vector.load %arg6[%c0_11, %c0_12] : memref<128x128xf32, #tpu.memory_space<vmem>>, vector<128x128xf32>
      tpu.vector_store %arg6[%c0_11, %c0_12], %12 {strides = array<i32>} : memref<128x128xf32, #tpu.memory_space<vmem>>, vector<128x128xf32>,
    } else {
    }
    %c0 = arith.constant 0 : index
    %c0_1 = arith.constant 0 : index
    %3 = vector.load %arg6[%c0, %c0_1] : memref<128x128xf32, #tpu.memory_space<vmem>>, vector<128x128xf32>
    %c0_2 = arith.constant 0 : index
    %c0_3 = arith.constant 0 : index
    %4 = vector.load %arg3[%c0_2, %c0_3] : memref<128x128xbf16, #tpu.memory_space<vmem>>, vector<128x128xbf16>
    %c0_4 = arith.constant 0 : index
    %c0_5 = arith.constant 0 : index
    %5 = vector.load %arg4[%c0_4, %c0_5] : memref<128x128xbf16, #tpu.memory_space<vmem>>, vector<128x128xbf16>
    %cst = arith.constant dense<0.000000e+00> : vector<128x128xf32>
    %6 = tpu.matmul %4, %5, %cst {dimension_numbers = #tpu.dot_dimension_numbers<[1], [0], [0], [1], [0, 0, 1, 1], [], []>} : vector<128x128xbf16>, vector<128x128xbf16>, vector<128x128xf32> -> vector<128x128xf32>
    %7 = arith.addf %3, %6 : vector<128x128xf32>
    %c0_6 = arith.constant 0 : index
    %c0_7 = arith.constant 0 : index
    %8 = vector.load %arg6[%c0_6, %c0_7] : memref<128x128xf32, #tpu.memory_space<vmem>>, vector<128x128xf32>
    tpu.vector_store %arg6[%c0_6, %c0_7], %7 {strides = array<i32>} : memref<128x128xf32, #tpu.memory_space<vmem>>, vector<128x128xf32>,
    %c0_i32_8 = arith.constant 0 : i32
    %9 = arith.cmpi eq, %arg2, %c0_i32_8 : i32
    %10 = arith.extui %9 : i1 to i32
    %c0_i32_9 = arith.constant 0 : i32
    %11 = arith.cmpi ne, %10, %c0_i32_9 : i32
    scf.if %11 {
      %c0_10 = arith.constant 0 : index
      %c0_11 = arith.constant 0 : index
      %12 = vector.load %arg6[%c0_10, %c0_11] : memref<128x128xf32, #tpu.memory_space<vmem>>, vector<128x128xf32>
      %cst_12 = arith.constant 0.000000e+00 : f32
      %13 = vector.broadcast %cst_12 : f32 to vector<128x128xf32>
      %14 = arith.cmpf ogt, %12, %13 : vector<128x128xf32>
      %cst_13 = arith.constant 2.000000e-01 : f32
      %15 = vector.broadcast %cst_13 : f32 to vector<128x128xf32>
      %16 = arith.mulf %15, %12 : vector<128x128xf32>
      %17 = arith.select %14, %12, %16 : vector<128x128xi1>, vector<128x128xf32>
      %c0_14 = arith.constant 0 : index
      %c0_15 = arith.constant 0 : index
      %18 = vector.load %arg5[%c0_14, %c0_15] : memref<128x128xf32, #tpu.memory_space<vmem>>, vector<128x128xf32>
      tpu.vector_store %arg5[%c0_14, %c0_15], %17 {strides = array<i32>} : memref<128x128xf32, #tpu.memory_space<vmem>>, vector<128x128xf32>,
    } else {
    }
    return
  }
  func.func @transform_0(%arg0: i32, %arg1: i32, %arg2: i32) -> (i32, i32) {
    %c0_i32 = arith.constant 0 : i32
    return %arg0, %arg2 : i32, i32
  }
  func.func @transform_1(%arg0: i32, %arg1: i32, %arg2: i32) -> (i32, i32) {
    %c0_i32 = arith.constant 0 : i32
    return %arg2, %arg1 : i32, i32
  }
  func.func @transform_2(%arg0: i32, %arg1: i32, %arg2: i32) -> (i32, i32) {
    %c0_i32 = arith.constant 0 : i32
    return %arg0, %arg1 : i32, i32
  }
}

</mosaic_0001>

<bundles_post_ra>
// kernel: tpu_custom_call.1
= control target key start
LH: loop header
LB: loop body
LE: loop exit
PB: predicated region body
PF: predicated region fallthrough
CT: control target
= control target key end

     0   :  { %7 = vsyncpa [#allocation4], 0  ;;  %s669_s0 = inlined_call_operand.hbm [shape: bf16[128,128], index: 0, kind: input, shape index: {}]   ;;  %s670_s1 = inlined_call_operand.hbm [shape: bf16[128,128], index: 1, kind: input, shape index: {}]   ;;  %s671_s2 = inlined_call_operand.hbm [shape: f32[128,128], index: 2, kind: output, shape index: {}]  }
   0x1   :  { %8 = vsyncpa [#allocation7], 0 }
   0x2   :  { %9 = vsyncpa [#allocation5], 0  ;;  %s610_s9 = smov [#allocation3]   ;;  %s538_s13 = scalar_lea.hbm %s669_s0, 1024 }
   0x3   :  { %s15_s10 = sshll.u32 %s610_s9, 4  ;;  %p539_p0 = scmp.ne.s32.totalorder %s669_s0, %s538_s13  ;;  %s16_s10 = int_to_ptr.vmem [resolvable:$true] %s15_s10 }
   0x4   :  { %p542_p1 = scmp.lt.u32.totalorder %s538_s13, %s669_s0 }
   0x6   :  { %p544_p2 = pnand %p542_p1, %p539_p0 }
   0x8   :  { %547 = shalt.err (!%p544_p2)
}
   0x9   :  { %s548_s18 = scalar_lea.vmem %s16_s10, 1024  ;;  %p553_p4 = scmp.lt.s32.totalorder %s16_s10, %s16_s10 }
   0xa   :  { %p549_p3 = scmp.ne.s32.totalorder %s16_s10, %s548_s18  ;;  %p554_p5 = scmp.lt.s32.totalorder %s548_s18, %s548_s18 }
   0xc   :  { %p555_p6 = por %p554_p5, %p553_p4 }
   0xe   :  { %p556_p7 = pnand %p555_p6, %p549_p3 }
  0x10   :  { %559 = shalt.err (!%p556_p7)
}
  0x11   :  { %s611_s19 = smov 64   ;;  %s612_s20 = smov 4  }
  0x12   :  { %21 = dma.hbm_to_vmem [thread:$0]  %s669_s0, 1024, %s16_s10, [#allocation4], %s611_s19, %s611_s19, %s612_s20  }
  0x13   :  { %s613_s23 = smov [#allocation6]   ;;  %s560_s27 = scalar_lea.hbm %s670_s1, 1024 }
  0x14   :  { %s27_s24 = sshll.u32 %s613_s23, 4  ;;  %p561_p8 = scmp.ne.s32.totalorder %s670_s1, %s560_s27  ;;  %s28_s24 = int_to_ptr.vmem [resolvable:$true] %s27_s24 }
  0x15   :  { %p564_p9 = scmp.lt.u32.totalorder %s560_s27, %s670_s1 }
  0x17   :  { %p566_p10 = pnand %p564_p9, %p561_p8 }
  0x19   :  { %569 = shalt.err (!%p566_p10)
}
  0x1a   :  { %s570_s4 = scalar_lea.vmem %s28_s24, 1024  ;;  %p575_p12 = scmp.lt.s32.totalorder %s28_s24, %s28_s24 }
  0x1b   :  { %p571_p11 = scmp.ne.s32.totalorder %s28_s24, %s570_s4  ;;  %p576_p13 = scmp.lt.s32.totalorder %s570_s4, %s570_s4 }
  0x1d   :  { %p577_p0 = por %p576_p13, %p575_p12 }
  0x1f   :  { %p578_p1 = pnand %p577_p0, %p571_p11 }
  0x21   :  { %581 = shalt.err (!%p578_p1)
}
  0x22   :  { %33 = dma.hbm_to_vmem [thread:$0]  %s670_s1, 1024, %s28_s24, [#allocation7], %s611_s19, %s611_s19, %s612_s20  }
  0x23   :  { %604 = dma.done.wait [#allocation4], 1024  }
  0x24   :  { %605 = vsyncadd [#allocation4], 4294966272 }
  0x25   :  { %606 = dma.done.wait [#allocation7], 1024  }
  0x26   :  { %607 = vsyncadd [#allocation7], 4294966272  ;;  %v522_v0 = vld [vmem:[#allocation6] sm:$0xff]   ;;  %v523_v1 = vld [vmem:[#allocation6 + $0x8] sm:$0xff]   ;;  %s614_s1 = smov [#allocation8]  }
  0x27   :  { %467 = vmatprep.subr.bf16.mxu0 %v522_v0  ;;  %499 = vmatprep.subr.bf16.mxu1 %v522_v0  ;;  %v524_v2 = vld [vmem:[#allocation6 + $0x10] sm:$0xff]   ;;  %v525_v3 = vld [vmem:[#allocation6 + $0x18] sm:$0xff]   ;;  %v530_v4 = vld [vmem:[#allocation3] sm:$0xff]   ;;  %s422_s6 = sshll.u32 %s614_s1, 4  ;;  %s423_s6 = int_to_ptr.vmem [resolvable:$true] %s422_s6 }
  0x28   :  { %468 = vmatpush3.bf16.msra.mxu0 %v522_v0  ;;  %507 = vmatpush3.bf16.msra.mxu1 %v522_v0  ;;  %v531_v5 = vld [vmem:[#allocation3 + $0x20] sm:$0xff]   ;;  %v527_v7 = vld [vmem:[#allocation6 + $0x28] sm:$0xff]   ;;  %v528_v8 = vld [vmem:[#allocation6 + $0x30] sm:$0xff]   ;;  %s582_s7 = scalar_lea.vmem %s423_s6, 2048  ;;  %p587_p3 = scmp.lt.s32.totalorder %s423_s6, %s423_s6 }
  0x29   :  { %469 = vmatprep.subr.bf16.mxu0 %v523_v1  ;;  %500 = vmatprep.subr.bf16.mxu1 %v523_v1  ;;  %v526_v6 = vld [vmem:[#allocation6 + $0x20] sm:$0xff]   ;;  %v529_v9 = vld [vmem:[#allocation6 + $0x38] sm:$0xff]   ;;  %v532_v10 = vld [vmem:[#allocation3 + $0x8] sm:$0xff]   ;;  %p583_p2 = scmp.ne.s32.totalorder %s423_s6, %s582_s7  ;;  %p588_p4 = scmp.lt.s32.totalorder %s582_s7, %s582_s7 }
  0x2a   :  { %483 = vmatprep.mubr.bf16.mxu0 %v530_v4  ;;  %491 = vmatprep.mubr.bf16.mxu1 %v531_v5  ;;  %v533_v11 = vld [vmem:[#allocation3 + $0x28] sm:$0xff]   ;;  %v534_v12 = vld [vmem:[#allocation3 + $0x10] sm:$0xff]   ;;  %v536_v14 = vld [vmem:[#allocation3 + $0x18] sm:$0xff]  }
  0x2b   :  { %v535_v13 = vld [vmem:[#allocation3 + $0x30] sm:$0xff]   ;;  %v537_v15 = vld [vmem:[#allocation3 + $0x38] sm:$0xff]   ;;  %p589_p5 = por %p588_p4, %p587_p3 }
  0x2c   :  { %470 = vmatpush3.bf16.msra.mxu0 %v523_v1  ;;  %508 = vmatpush3.bf16.msra.mxu1 %v523_v1 }
  0x2d   :  { %471 = vmatprep.subr.bf16.mxu0 %v524_v2  ;;  %501 = vmatprep.subr.bf16.mxu1 %v524_v2  ;;  %p590_p6 = pnand %p589_p5, %p583_p2 }
  0x30   :  { %472 = vmatpush3.bf16.msra.mxu0 %v524_v2  ;;  %509 = vmatpush3.bf16.msra.mxu1 %v524_v2 }
  0x31   :  { %473 = vmatprep.subr.bf16.mxu0 %v525_v3  ;;  %502 = vmatprep.subr.bf16.mxu1 %v525_v3 }
  0x34   :  { %474 = vmatpush3.bf16.msra.mxu0 %v525_v3  ;;  %510 = vmatpush3.bf16.msra.mxu1 %v525_v3 }
  0x35   :  { %475 = vmatprep.subr.bf16.mxu0 %v526_v6  ;;  %503 = vmatprep.subr.bf16.mxu1 %v526_v6 }
  0x38   :  { %476 = vmatpush3.bf16.msra.mxu0 %v526_v6  ;;  %511 = vmatpush3.bf16.msra.mxu1 %v526_v6 }
  0x39   :  { %477 = vmatprep.subr.bf16.mxu0 %v527_v7  ;;  %504 = vmatprep.subr.bf16.mxu1 %v527_v7 }
  0x3c   :  { %478 = vmatpush3.bf16.msra.mxu0 %v527_v7  ;;  %512 = vmatpush3.bf16.msra.mxu1 %v527_v7 }
  0x3d   :  { %479 = vmatprep.subr.bf16.mxu0 %v528_v8  ;;  %505 = vmatprep.subr.bf16.mxu1 %v528_v8 }
  0x40   :  { %480 = vmatpush3.bf16.msra.mxu0 %v528_v8  ;;  %513 = vmatpush3.bf16.msra.mxu1 %v528_v8 }
  0x41   :  { %481 = vmatprep.subr.bf16.mxu0 %v529_v9  ;;  %506 = vmatprep.subr.bf16.mxu1 %v529_v9 }
  0x44   :  { %482 = vmatpush3.bf16.msra.mxu0 %v529_v9  ;;  %514 = vmatpush3.bf16.msra.mxu1 %v529_v9 }
  0x47   :  { %484 = vmatmul.mubr.bf16.vlgmr.msra.gmra.mrb[0].mxu0 %v532_v10  ;;  %492 = vmatmul.mubr.bf16.vlgmr.msra.gmra.mrb[0].mxu1 %v533_v11 }
  0x48   :  { %487 = vmatprep.mubr.bf16.mxu0 %v534_v12  ;;  %495 = vmatprep.mubr.bf16.mxu1 %v535_v13 }
  0x4f   :  { %488 = vmatmul.mubr.bf16.gmra.mrb[4].mxu0 %v536_v14  ;;  %496 = vmatmul.mubr.bf16.gmra.mrb[4].mxu1 %v537_v15 }
 0x11a   :  { %v485_v16 = vpop.f32.mrb[0].mxu0  ;;  %v493_v17 = vpop.f32.mrb[0].mxu1 }
 0x11b   :  { %vm355_vm0 = vcmp.gt.f32.partialorder %v485_v16, 0.0  ;;  %v371_v18 = vmul.f32 0.2, %v485_v16  ;;  %vm363_vm1 = vcmp.gt.f32.partialorder %v493_v17, 0.0  ;;  %v379_v19 = vmul.f32 0.2, %v493_v17 }
 0x11c   :  { %v239_v20 = vpop.f32.mrb[1].mxu0  ;;  %v271_v21 = vpop.f32.mrb[1].mxu1 }
 0x11d   :  { %v387_v22 = vsel %vm355_vm0, %v485_v16, %v371_v18  ;;  %v395_v23 = vsel %vm363_vm1, %v493_v17, %v379_v19  ;;  %vm353_vm2 = vcmp.gt.f32.partialorder %v239_v20, 0.0  ;;  %v369_v24 = vmul.f32 0.2, %v239_v20  ;;  %v486_v25 = vpop.f32.mrb[2].mxu0  ;;  %v494_v26 = vpop.f32.mrb[2].mxu1 }
 0x11e   :  { %403 = vst [vmem:[#allocation8 + $0x10] sm:$0xff] %v387_v22  ;;  %411 = vst [vmem:[#allocation8 + $0x50] sm:$0xff] %v395_v23  ;;  %vm361_vm3 = vcmp.gt.f32.partialorder %v271_v21, 0.0  ;;  %v377_v27 = vmul.f32 0.2, %v271_v21  ;;  %vm356_vm4 = vcmp.gt.f32.partialorder %v486_v25, 0.0 }
 0x11f   :  { %v372_v28 = vmul.f32 0.2, %v486_v25  ;;  %v385_v29 = vsel %vm353_vm2, %v239_v20, %v369_v24  ;;  %vm364_vm5 = vcmp.gt.f32.partialorder %v494_v26, 0.0  ;;  %v380_v30 = vmul.f32 0.2, %v494_v26  ;;  %v242_v31 = vpop.f32.mrb[3].mxu0 }
 0x120   :  { %v274_v32 = vpop.f32.mrb[3].mxu1  ;;  %401 = vst [vmem:[#allocation8] sm:$0xff] %v385_v29  ;;  %v393_v33 = vsel %vm361_vm3, %v271_v21, %v377_v27  ;;  %vm354_vm6 = vcmp.gt.f32.partialorder %v242_v31, 0.0  ;;  %v370_v35 = vmul.f32 0.2, %v242_v31 }
 0x121   :  { %v388_v34 = vsel %vm356_vm4, %v486_v25, %v372_v28  ;;  %409 = vst [vmem:[#allocation8 + $0x40] sm:$0xff] %v393_v33  ;;  %v396_v36 = vsel %vm364_vm5, %v494_v26, %v380_v30  ;;  %vm362_vm7 = vcmp.gt.f32.partialorder %v274_v32, 0.0  ;;  %v378_v37 = vmul.f32 0.2, %v274_v32 }
 0x122   :  { %404 = vst [vmem:[#allocation8 + $0x18] sm:$0xff] %v388_v34  ;;  %412 = vst [vmem:[#allocation8 + $0x58] sm:$0xff] %v396_v36  ;;  %v386_v38 = vsel %vm354_vm6, %v242_v31, %v370_v35  ;;  %v489_v39 = vpop.f32.mrb[4].mxu0  ;;  %v497_v40 = vpop.f32.mrb[4].mxu1 }
 0x123   :  { %402 = vst [vmem:[#allocation8 + $0x8] sm:$0xff] %v386_v38  ;;  %v394_v41 = vsel %vm362_vm7, %v274_v32, %v378_v37  ;;  %vm359_vm8 = vcmp.gt.f32.partialorder %v489_v39, 0.0  ;;  %v375_v42 = vmul.f32 0.2, %v489_v39  ;;  %vm367_vm9 = vcmp.gt.f32.partialorder %v497_v40, 0.0  ;;  %v255_v43 = vpop.f32.mrb[5].mxu0 }
 0x124   :  { %v287_v44 = vpop.f32.mrb[5].mxu1  ;;  %410 = vst [vmem:[#allocation8 + $0x48] sm:$0xff] %v394_v41  ;;  %v383_v45 = vmul.f32 0.2, %v497_v40  ;;  %vm357_vm10 = vcmp.gt.f32.partialorder %v255_v43, 0.0  ;;  %v490_v49 = vpop.f32.mrb[6].mxu0 }
 0x125   :  { %v373_v46 = vmul.f32 0.2, %v255_v43  ;;  %vm365_vm11 = vcmp.gt.f32.partialorder %v287_v44, 0.0  ;;  %v391_v47 = vsel %vm359_vm8, %v489_v39, %v375_v42  ;;  %v381_v48 = vmul.f32 0.2, %v287_v44  ;;  %v498_v50 = vpop.f32.mrb[6].mxu1 }
 0x126   :  { %407 = vst [vmem:[#allocation8 + $0x30] sm:$0xff] %v391_v47  ;;  %v399_v51 = vsel %vm367_vm9, %v497_v40, %v383_v45  ;;  %vm360_vm12 = vcmp.gt.f32.partialorder %v490_v49, 0.0  ;;  %v376_v53 = vmul.f32 0.2, %v490_v49  ;;  %v258_v54 = vpop.f32.mrb[7].mxu0  ;;  %v290_v55 = vpop.f32.mrb[7].mxu1 }
 0x127   :  { %v389_v52 = vsel %vm357_vm10, %v255_v43, %v373_v46  ;;  %415 = vst [vmem:[#allocation8 + $0x70] sm:$0xff] %v399_v51  ;;  %v397_v56 = vsel %vm365_vm11, %v287_v44, %v381_v48  ;;  %vm368_vm13 = vcmp.gt.f32.partialorder %v498_v50, 0.0  ;;  %v384_v57 = vmul.f32 0.2, %v498_v50 }
 0x128   :  { %405 = vst [vmem:[#allocation8 + $0x20] sm:$0xff] %v389_v52  ;;  %vm358_vm14 = vcmp.gt.f32.partialorder %v258_v54, 0.0  ;;  %413 = vst [vmem:[#allocation8 + $0x60] sm:$0xff] %v397_v56  ;;  %v392_v58 = vsel %vm360_vm12, %v490_v49, %v376_v53  ;;  %v374_v59 = vmul.f32 0.2, %v258_v54  ;;  %vm366_vm15 = vcmp.gt.f32.partialorder %v290_v55, 0.0 }
 0x129   :  { %v382_v60 = vmul.f32 0.2, %v290_v55  ;;  %408 = vst [vmem:[#allocation8 + $0x38] sm:$0xff] %v392_v58  ;;  %v400_v61 = vsel %vm368_vm13, %v498_v50, %v384_v57 }
 0x12a   :  { %416 = vst [vmem:[#allocation8 + $0x78] sm:$0xff] %v400_v61  ;;  %v390_v62 = vsel %vm358_vm14, %v258_v54, %v374_v59 }
 0x12b   :  { %v398_v63 = vsel %vm366_vm15, %v290_v55, %v382_v60  ;;  %406 = vst [vmem:[#allocation8 + $0x28] sm:$0xff] %v390_v62 }
 0x12c   :  { %414 = vst [vmem:[#allocation8 + $0x68] sm:$0xff] %v398_v63 }
 0x12d   :  { %593 = shalt.err (!%p590_p6)
}
 0x12e   :  { %s594_s10 = scalar_lea.hbm %s671_s2, 2048 }
 0x12f   :  { %p595_p7 = scmp.ne.s32.totalorder %s671_s2, %s594_s10  ;;  %p598_p8 = scmp.lt.u32.totalorder %s594_s10, %s671_s2 }
 0x131   :  { %p600_p9 = pnand %p598_p8, %p595_p7 }
 0x133   :  { %603 = shalt.err (!%p600_p9)
}
 0x134   :  { %s615_s15 = smov 128   ;;  %s616_s16 = smov 8  }
 0x135   :  { %428 = dma.vmem_to_hbm [thread:$0]  %s423_s6, 2048, %s671_s2, [#allocation5], %s615_s15, %s615_s15, %s616_s16  }
 0x136   :  { %608 = dma.done.wait [#allocation5], 2048  }
 0x137   :  { %609 = vsyncadd [#allocation5], 4294965248 }
 0x138   :  { %432 = vsyncpa [#allocation4], 1 }
 0x139   :  { %433 = vsyncpa [#allocation7], 1 }
 0x13a   :  { %434 = vsyncpa [#allocation5], 1 }

</bundles_post_ra>
